<compile_context>
chip_gen: v5e
topology: v5e:2x2
jax: 0.10.0
libtpu: 0.0.40
codegen_flags: <defaults>
</compile_context>

<pallas_src>
import functools

import jax
import jax.numpy as jnp
from jax import lax
from jax.experimental import pallas as pl
from jax.experimental.pallas import tpu as pltpu

BLOCK_SIZE = 64   # max context length (size of the tril buffer in the PyTorch module)
N_EMBD = 120      # C
HEAD_SIZE = 16    # head_size
DROPOUT = 0.2     # unused (eval mode)

C_PAD = 128       # embedding dim padded to one full lane group
H_PAD = 128       # per-projection output padded to 128 lanes -> lane-dense MXU N & stores


def _head_kernel(x_ref, w_ref, o_ref, *, scale, compute_dtype):
    # x_ref: (Bt, T, C_PAD)   w_ref: (C_PAD, 3*H_PAD) = [K|Q|V] zero-padded   o_ref: (Bt, T, H_PAD)
    bt, t, c = x_ref.shape

    x = x_ref[...].astype(compute_dtype)           # (Bt, T, 128)
    w = w_ref[...].astype(compute_dtype)           # (128, 384)

    # One fused projection matmul for K, Q, V (f32 accumulation on the MXU).
    # The (Bt, T, C) -> (Bt*T, C) collapse only merges leading dims (last dim untouched) -> free.
    proj = jnp.dot(x.reshape(bt * t, c), w,
                   preferred_element_type=jnp.float32).reshape(bt, t, 3 * H_PAD)
    # 128-lane-aligned slices -> no masked/partial-lane copies.
    k = proj[:, :, 0 * H_PAD:1 * H_PAD]            # (Bt, T, 128), real data in [..., :16]
    q = proj[:, :, 1 * H_PAD:2 * H_PAD]
    v = proj[:, :, 2 * H_PAD:3 * H_PAD]

    # scores = Q @ K^T / sqrt(C): contract the head dim directly (no materialized transpose in
    # VMEM; the layout transpose rides the XLU slot).  Zero-padded head columns contribute 0.
    scores = jnp.einsum("btd,bsd->bts",
                        q.astype(compute_dtype), k.astype(compute_dtype),
                        preferred_element_type=jnp.float32) * scale      # (Bt, T, T) f32

    # Causal mask (tril): keep col <= row, else -inf (diagonal kept -> row max stays finite).
    row = lax.broadcasted_iota(jnp.int32, (t, t), 0)
    col = lax.broadcasted_iota(jnp.int32, (t, t), 1)
    scores = jnp.where((row >= col)[None, :, :], scores, -jnp.inf)

    # Numerically stable softmax in f32; normalization via EUP approx reciprocal (free slot).
    m = jnp.max(scores, axis=-1, keepdims=True)
    p = jnp.exp(scores - m)
    p = p * pl.reciprocal(jnp.sum(p, axis=-1, keepdims=True), approx=True)

    # dropout: identity (eval mode)

    out = jnp.einsum("bts,bsh->bth",
                     p.astype(compute_dtype), v.astype(compute_dtype),
                     preferred_element_type=jnp.float32)                 # (Bt, T, 128)
    o_ref[...] = out.astype(o_ref.dtype)           # lane-dense, unmasked 128-wide stores


def head_forward(x, wk_t, wq_t, wv_t, *, block_b=8, compute_dtype=jnp.float32):
    """x: (B, T, C) f32; w*_t: (C, H) f32 (nn.Linear weights pre-transposed so kernel does x @ W).

    compute_dtype=jnp.bfloat16 feeds bf16 operands to the MXU (f32 accumulation); mask/softmax
    always stay f32 (safe on v5e where the VPU/EUP have no bf16 path).
    """
    B, T, C = x.shape
    H = wk_t.shape[1]
    assert C <= C_PAD and H <= H_PAD and T <= BLOCK_SIZE
    scale = 1.0 / (C ** 0.5)   # PyTorch divides by sqrt(C) of the *unpadded* embedding dim

    # Pad embedding dim to 128 (zeros -> exact) and fuse K|Q|V into one lane-dense weight.
    x_pad = jnp.pad(x, ((0, 0), (0, 0), (0, C_PAD - C)))

    def _pad_w(w):  # (C, H) -> (C_PAD, H_PAD), zero padded
        return jnp.pad(w, ((0, C_PAD - C), (0, H_PAD - H)))

    w_fused = jnp.concatenate([_pad_w(wk_t), _pad_w(wq_t), _pad_w(wv_t)], axis=1)  # (128, 384)

    # Block several batch elements per grid step (largest divisor of B that is <= block_b).
    bb = max(1, min(block_b, B))
    while B % bb:
        bb -= 1
    grid = (B // bb,)

    kernel = functools.partial(_head_kernel, scale=scale, compute_dtype=compute_dtype)
    out_pad = pl.pallas_call(
        kernel,
        out_shape=jax.ShapeDtypeStruct((B, T, H_PAD), x.dtype),
        grid_spec=pltpu.PrefetchScalarGridSpec(
            num_scalar_prefetch=0,
            grid=grid,
            in_specs=[
                pl.BlockSpec((bb, T, C_PAD), lambda b: (b, 0, 0)),
                # Grid-invariant block index -> weights DMA'd once, stay resident across steps.
                pl.BlockSpec((C_PAD, 3 * H_PAD), lambda b: (0, 0)),
            ],
            out_specs=pl.BlockSpec((bb, T, H_PAD), lambda b: (b, 0, 0)),
        ),
        compiler_params=pltpu.CompilerParams(dimension_semantics=("parallel",)),
    )(x_pad, w_fused)
    return out_pad[:, :, :H]


def head_reference(x, wk_t, wq_t, wv_t):
    """Pure-JAX reference mirroring the PyTorch forward (eval mode)."""
    B, T, C = x.shape
    k = x @ wk_t
    q = x @ wq_t
    v = x @ wv_t
    attn = jnp.einsum("btd,bsd->bts", q, k) / (C ** 0.5)
    mask = jnp.tril(jnp.ones((T, T), dtype=bool))
    attn = jnp.where(mask[None, :, :], attn, -jnp.inf)
    attn = jax.nn.softmax(attn, axis=-1)
    return attn @ v


if __name__ == "__main__":
    key = jax.random.PRNGKey(0)
    k_x, k_wk, k_wq, k_wv = jax.random.split(key, 4)

    B, T, C, H = 4, BLOCK_SIZE, N_EMBD, HEAD_SIZE

    x = jax.random.normal(k_x, (B, T, C), dtype=jnp.float32)
    # nn.Linear(n_embd, head_size, bias=False) weight has shape (H, C); store transposed (C, H).
    bound = 1.0 / (C ** 0.5)
    wk_t = jax.random.uniform(k_wk, (C, H), jnp.float32, -bound, bound)
    wq_t = jax.random.uniform(k_wq, (C, H), jnp.float32, -bound, bound)
    wv_t = jax.random.uniform(k_wv, (C, H), jnp.float32, -bound, bound)

    ref = head_reference(x, wk_t, wq_t, wv_t)

    # f32 path: block_b=2 -> 2 parallel grid steps (keeps both v7x TensorCores busy).
    out = head_forward(x, wk_t, wq_t, wv_t, block_b=2, compute_dtype=jnp.float32)
    out = jax.block_until_ready(out)
    assert out.shape == (B, T, H)
    assert jnp.allclose(out, ref, atol=5e-3, rtol=5e-3), "f32 kernel mismatch vs reference"

    # bf16-MXU path (v6e/v7x recommendation): looser tolerance for the bf16 operand rounding.
    out_bf16 = head_forward(x, wk_t, wq_t, wv_t, block_b=2, compute_dtype=jnp.bfloat16)
    out_bf16 = jax.block_until_ready(out_bf16)
    assert jnp.allclose(out_bf16, ref, atol=5e-2, rtol=5e-2), "bf16 kernel mismatch vs reference"

    print("KERNEL_OK")
</pallas_src>

<mosaic_0001>
module attributes {stable_mosaic.version = 11 : i64} {
  func.func @_head_kernel(%arg0: i32, %arg1: memref<2x64x128xf32, #tpu.memory_space<vmem>>, %arg2: memref<128x384xf32, #tpu.memory_space<vmem>>, %arg3: memref<2x64x128xf32, #tpu.memory_space<vmem>>) attributes {dimension_semantics = [#tpu.dimension_semantics<parallel>], iteration_bounds = array<i64: 2>, scalar_prefetch = 0 : i64, scratch_operands = 0 : i64, tpu.core_type = #tpu.core_type<tc>, window_params = [{transform_indices = @transform_0, window_bounds = array<i64: 2, 64, 128>}, {pipeline_mode = #tpu.pipeline_mode<synchronous>, transform_indices = @transform_1, window_bounds = array<i64: 128, 384>}, {transform_indices = @transform_2, window_bounds = array<i64: 2, 64, 128>}]} {
    %c0 = arith.constant 0 : index
    %c0_0 = arith.constant 0 : index
    %c0_1 = arith.constant 0 : index
    %0 = vector.load %arg1[%c0, %c0_0, %c0_1] : memref<2x64x128xf32, #tpu.memory_space<vmem>>, vector<2x64x128xf32>
    %c0_2 = arith.constant 0 : index
    %c0_3 = arith.constant 0 : index
    %1 = vector.load %arg2[%c0_2, %c0_3] : memref<128x384xf32, #tpu.memory_space<vmem>>, vector<128x384xf32>
    %2 = vector.shape_cast %0 : vector<2x64x128xf32> to vector<128x128xf32>
    %cst = arith.constant dense<0.000000e+00> : vector<128x384xf32>
    %3 = tpu.matmul %2, %1, %cst {dimension_numbers = #tpu.dot_dimension_numbers<[1], [0], [0], [1], [0, 0, 1, 1], [], []>} : vector<128x128xf32>, vector<128x384xf32>, vector<128x384xf32> -> vector<128x384xf32>
    %4 = vector.shape_cast %3 : vector<128x384xf32> to vector<2x64x384xf32>
    %5 = vector.extract_strided_slice %4 {offsets = [0, 0, 0], sizes = [2, 64, 128], strides = [1, 1, 1]} : vector<2x64x384xf32> to vector<2x64x128xf32>
    %6 = vector.extract_strided_slice %4 {offsets = [0, 0, 128], sizes = [2, 64, 128], strides = [1, 1, 1]} : vector<2x64x384xf32> to vector<2x64x128xf32>
    %7 = vector.extract_strided_slice %4 {offsets = [0, 0, 256], sizes = [2, 64, 128], strides = [1, 1, 1]} : vector<2x64x384xf32> to vector<2x64x128xf32>
    "tpu.trace_start"() <{level = 10 : i32, message = "btd,bsd->bts"}> : () -> ()
    %cst_4 = arith.constant dense<0.000000e+00> : vector<2x64x64xf32>
    %8 = tpu.matmul %6, %5, %cst_4 {dimension_numbers = #tpu.dot_dimension_numbers<[2], [2], [1], [1], [0, 0, 0, 1, 1, 1], [0], [0]>} : vector<2x64x128xf32>, vector<2x64x128xf32>, vector<2x64x64xf32> -> vector<2x64x64xf32>
    "tpu.trace_stop"() : () -> ()
    %cst_5 = arith.constant 0.0912870914 : f32
    %9 = vector.broadcast %cst_5 : f32 to vector<2x64x64xf32>
    %10 = arith.mulf %8, %9 : vector<2x64x64xf32>
    %11 = tpu.iota {dimensions = array<i32: 0>} : vector<64x64xi32>
    %12 = tpu.iota {dimensions = array<i32: 1>} : vector<64x64xi32>
    %13 = arith.cmpi sge, %11, %12 : vector<64x64xi32>
    %14 = vector.shape_cast %13 : vector<64x64xi1> to vector<1x64x64xi1>
    %cst_6 = arith.constant 0xFF800000 : f32
    %15 = vector.shape_cast %14 : vector<1x64x64xi1> to vector<1x64x64xi1>
    %16 = vector.broadcast %15 : vector<1x64x64xi1> to vector<2x64x64xi1>
    %17 = vector.broadcast %cst_6 : f32 to vector<2x64x64xf32>
    %18 = arith.select %16, %10, %17 : vector<2x64x64xi1>, vector<2x64x64xf32>
    %cst_7 = arith.constant dense<0xFF800000> : vector<2x64xf32>
    %19 = vector.multi_reduction <maximumf>, %18, %cst_7 [2] : vector<2x64x64xf32> to vector<2x64xf32>
    %20 = vector.shape_cast %19 : vector<2x64xf32> to vector<2x64x1xf32>
    %21 = vector.broadcast %20 : vector<2x64x1xf32> to vector<2x64x64xf32>
    %22 = arith.subf %18, %21 : vector<2x64x64xf32>
    %23 = math.exp %22 : vector<2x64x64xf32>
    %cst_8 = arith.constant dense<0.000000e+00> : vector<2x64xf32>
    %24 = vector.multi_reduction <add>, %23, %cst_8 [2] : vector<2x64x64xf32> to vector<2x64xf32>
    %25 = vector.shape_cast %24 : vector<2x64xf32> to vector<2x64x1xf32>
    %26 = tpu.reciprocal %25 {approx = true} : vector<2x64x1xf32> -> vector<2x64x1xf32>
    %27 = vector.broadcast %26 : vector<2x64x1xf32> to vector<2x64x64xf32>
    %28 = arith.mulf %23, %27 : vector<2x64x64xf32>
    "tpu.trace_start"() <{level = 10 : i32, message = "bts,bsh->bth"}> : () -> ()
    %cst_9 = arith.constant dense<0.000000e+00> : vector<2x64x128xf32>
    %29 = tpu.matmul %28, %7, %cst_9 {dimension_numbers = #tpu.dot_dimension_numbers<[2], [1], [1], [2], [0, 0, 0, 1, 1, 2], [0], [0]>} : vector<2x64x64xf32>, vector<2x64x128xf32>, vector<2x64x128xf32> -> vector<2x64x128xf32>
    "tpu.trace_stop"() : () -> ()
    %c0_10 = arith.constant 0 : index
    %c0_11 = arith.constant 0 : index
    %c0_12 = arith.constant 0 : index
    %30 = vector.load %arg3[%c0_10, %c0_11, %c0_12] : memref<2x64x128xf32, #tpu.memory_space<vmem>>, vector<2x64x128xf32>
    tpu.vector_store %arg3[%c0_10, %c0_11, %c0_12], %29 {strides = array<i32>} : memref<2x64x128xf32, #tpu.memory_space<vmem>>, vector<2x64x128xf32>,
    return
  }
  func.func @transform_0(%arg0: i32) -> (i32, i32, i32) {
    %c0_i32 = arith.constant 0 : i32
    %c0_i32_0 = arith.constant 0 : i32
    %c0_i32_1 = arith.constant 0 : i32
    return %arg0, %c0_i32, %c0_i32_0 : i32, i32, i32
  }
  func.func @transform_1(%arg0: i32) -> (i32, i32) {
    %c0_i32 = arith.constant 0 : i32
    %c0_i32_0 = arith.constant 0 : i32
    %c0_i32_1 = arith.constant 0 : i32
    return %c0_i32, %c0_i32_0 : i32, i32
  }
  func.func @transform_2(%arg0: i32) -> (i32, i32, i32) {
    %c0_i32 = arith.constant 0 : i32
    %c0_i32_0 = arith.constant 0 : i32
    %c0_i32_1 = arith.constant 0 : i32
    return %arg0, %c0_i32, %c0_i32_0 : i32, i32, i32
  }
}

</mosaic_0001>

<bundles_post_ra>
// kernel: tpu_custom_call.1
= control target key start
LH: loop header
LB: loop body
LE: loop exit
PB: predicated region body
PF: predicated region fallthrough
CT: control target
= control target key end

     0   :  { %7 = vsyncpa [#allocation3], 0  ;;  %s1859_s0 = inlined_call_operand.hbm [shape: f32[4,64,128], index: 0, kind: input, shape index: {}]   ;;  %s1860_s1 = inlined_call_operand.hbm [shape: f32[128,384], index: 1, kind: input, shape index: {}]   ;;  %s1861_s2 = inlined_call_operand.hbm [shape: f32[4,64,128], index: 2, kind: output, shape index: {}]  }
   0x1   :  { %9 = vsyncpa [#allocation3 + $0x1], 0 }
   0x2   :  { %10 = vsyncpa [#allocation6], 0 }
   0x3   :  { %11 = vsyncpa [#allocation4], 0 }
   0x4   :  { %13 = vsyncpa [#allocation4 + $0x1], 0  ;;  %s1366_s9 = smov 0   ;;  %s1368_s10 = smov 0  }
   0x5   :  { %s1370_s11 = smov 0   ;;  %s1372_s12 = smov 0  }
   0x6 LB: > { %s1387_s13 = sadd.s32 4294967295, %s1342_s12   ;;  %s1015_s14 = sadd.s32 4294967294, %s1342_s12   ;;  %s1342_s12 = sphi %s1372_s12, %s1871_s12   ;;  %s1338_s11 = sphi %s1370_s11, %s1870_s11   ;;  %s1334_s10 = sphi %s1368_s10, %s1869_s10   ;;  %s1330_s9 = sphi %s1366_s9, %s1868_s9  }
   0x7   : > { %p39_p0 = scmp.ne.s32.totalorder %s1334_s10, %s1330_s9  ;;  %p40_p1 = scmp.eq.s32.totalorder %s1387_s13, 0 }
   0x8   : > { %p84_p2 = scmp.eq.s32.totalorder %s1387_s13, 1  ;;  %p90_p3 = scmp.eq.s32.totalorder %s1015_s14, 1 }
   0x9   : > { %p1396_p4 = por %p40_p1, %p39_p0  ;;  %p1016_p5 = scmp.ge.s32.totalorder %s1342_s12, 1 }
   0xa   : > { %p1401_p6 = por %p90_p3, %p39_p0  ;;  %p97_p7 = scmp.lt.s32.totalorder %s1342_s12, 3 }
   0xb   : > { %s108_s19 = sshll.u32 %s1860_s1, 4  ;;  %s1344_s21 = smov [#allocation5]   ;;  %s109_s19 = int_to_ptr.hbm [resolvable:$true] %s108_s19 }
   0xc   : > { %p1409_p8 = pnand %p1016_p5, %p97_p7  ;;  %s110_s22 = sshll.u32 %s1344_s21, 4  ;;  %s111_s22 = int_to_ptr.vmem [resolvable:$true] %s110_s22 }
   0xd   : > { %s1419_s23 = sadd.s32 1, %s1342_s12   ;;  %s1345_s24 = smov 384  }
   0xe   : > { %p1093_p9 = pneg %p1409_p8  ;;  %s1346_s25 = smov 24  }
   0xf   : > { %s23_s26 = ssub.s32 %s1342_s12, %s1419_s23  ;;  %s26_s27 = sadd.s32 1, %s1338_s11 }
  0x10   : > { %p1094_p10 = pnand %p1093_p9, %p40_p1  ;;  %p24_p12 = scmp.eq.s32.totalorder %s23_s26, 0 }
  0x11   : > { %p33_p13 = scmp.ne.s32.totalorder %s1338_s11, %s1334_s10  ;;  %p34_p0 = scmp.eq.s32.totalorder %s1342_s12, 0 }
  0x12   : > { %1096 = dma.hbm_to_vmem [thread:$0]  (!%p1094_p10), %s109_s19, 6144, %s111_s22, [#allocation6], %s1345_s24, %s1345_s24, %s1346_s25  }
  0x13   : > { %p1106_p3 = scmp.lt.s32.totalorder %s1342_s12, 2  ;;  %p35_p5 = por %p34_p0, %p33_p13 }
  0x14   : > { %s1429_s28 = scalar_select %p24_p12, %s1338_s11, %s26_s27  }
  0x15   : > { %p1433_p7 = por %p84_p2, %p33_p13  ;;  %s124_s30 = sand.u32 1, %s1338_s11  }
  0x16   : > { %s1050_s3 = sshll.u32 %s1342_s12, 7  ;;  %s1019_s4 = sshll.u32 %s124_s30, 7 }
  0x17   : > { %s134_s7 = scalar_lea.hbm %s1859_s0, %s1050_s3  ;;  %s128_s14 = scalar_lea.vmem [#allocation2], %s1019_s4 }
  0x18   : > { %s135_s8 = sshll.u32 %s134_s7, 4  ;;  %s137_s17 = sshll.u32 %s128_s14, 4  ;;  %s136_s8 = int_to_ptr.hbm [resolvable:$true] %s135_s8  ;;  %s138_s17 = int_to_ptr.vmem [resolvable:$true] %s137_s17 }
  0x19   : > { %p1444_p9 = pnand %p1106_p3, %p35_p5  ;;  %s125_s19 = scalar_lea.sflag [#allocation3], %s124_s30 }
  0x1a   : > { %s1242_s21 = sshra.s32 %s136_s8, 4  ;;  %s1249_s26 = scalar_lea.hbm %s1859_s0, 256  ;;  %s1243_s21 = int_to_ptr.hbm [resolvable:$true] %s1242_s21 }
  0x1b   : > { %s1244_s22 = scalar_lea.hbm %s1243_s21, 128  ;;  %p1246_p10 = pneg %p1444_p9 }
  0x1c   : > { %p1245_p2 = scmp.ne.s32.totalorder %s1243_s21, %s1244_s22  ;;  %p1250_p0 = scmp.lt.s32.totalorder %s1243_s21, %s1859_s0 }
  0x1d   : > { %p1251_p3 = scmp.lt.s32.totalorder %s1249_s26, %s1244_s22 }
  0x1e   : > { %p1247_p12 = pnand %p1246_p10, %p1245_p2 }
  0x1f   : > { %p1252_p5 = por %p1251_p3, %p1250_p0 }
  0x20   : > { %p1248_p13 = pneg %p1247_p12 }
  0x22   : > { %p1253_p11 = pnand %p1252_p5, %p1248_p13 }
  0x24   : > { %1256 = shalt.err (!%p1253_p11)
}
  0x25   : > { %s1347_s30 = smov 128   ;;  %s1348_s4 = smov 8  }
  0x26   : > { %1100 = dma.hbm_to_vmem [thread:$0]  (!%p1444_p9), %s136_s8, 2048, %s138_s17, %s125_s19, %s1347_s30, %s1347_s30, %s1348_s4  }
  0x27   : > { %149 = sbr.rel (%p1409_p8) target bundleno = 947 (0x3b3), region = 28  ;;  %s1461_s5 = sand.u32 (!%p1409_p8), 1, %s1334_s10  }
  0x28   : > { %s1024_s6 = sshll.u32 (!%p1409_p8), %s1461_s5, 7  ;;  %s152_s7 = scalar_lea.sflag (!%p1409_p8), [#allocation3], %s1461_s5 }
  0x29   : > { %s1467_s14 = scalar_lea.vmem (!%p1409_p8), [#allocation2], %s1024_s6 }
  0x2c   : > { %1317 = dma.done.wait (%p1396_p4), %s152_s7, 2048  }
  0x2d   : > { %1319 = vsyncadd (%p1396_p4), %s152_s7, 4294965248 }
  0x2e   : > { %1321 = dma.done.wait (%p40_p1), [#allocation6], 6144  }
  0x2f   : > { %1323 = vsyncadd (%p40_p1), [#allocation6], 4294961152  ;;  %v245_v0 = vld [vmem:[#allocation5 + $0x168] sm:$0xff]  ;;  %v242_v1 = vld [vmem:[#allocation5 + $0x150] sm:$0xff]  ;;  %vm592_vm1 = vcmask 523264   ;;  %s1805_s15 = scalar_lea.vmem [#allocation7], %s1024_s6 }
  0x30   : > { %248 = vmatpush.msra.mxu0 %v245_v0  ;;  %1053 = vmatpush.msra.mxu2 %v245_v0  ;;  %v239_v2 = vld [vmem:[#allocation5 + $0x138] sm:$0xff]  ;;  %v236_v3 = vld [vmem:[#allocation5 + $0x120] sm:$0xff]  ;;  %v233_v4 = vld [vmem:[#allocation5 + $0x108] sm:$0xff]  ;;  %s1052_s20 = sshll.u32 %s1387_s13, 7  ;;  %s929_s19 = sshll.u32 %s1805_s15, 4  ;;  %s930_s19 = int_to_ptr.vmem [resolvable:$true] %s929_s19 }
  0x31   : > { %v230_v5 = vld [vmem:[#allocation5 + $0xf0] sm:$0xff]  ;;  %v227_v6 = vld [vmem:[#allocation5 + $0xd8] sm:$0xff]  ;;  %v224_v7 = vld [vmem:[#allocation5 + $0xc0] sm:$0xff]  ;;  %s928_s18 = scalar_lea.hbm %s1861_s2, %s1052_s20  ;;  %s916_s22 = scalar_lea.sflag [#allocation4], %s1461_s5 }
  0x32   : > { %249 = vmatpush.msra.mxu0 %v242_v1  ;;  %1054 = vmatpush.msra.mxu2 %v242_v1  ;;  %v221_v8 = vld [vmem:[#allocation5 + $0xa8] sm:$0xff]  ;;  %v218_v9 = vld [vmem:[#allocation5 + $0x90] sm:$0xff]  ;;  %v215_v10 = vld [vmem:[#allocation5 + $0x78] sm:$0xff]  ;;  %s931_s21 = sshll.u32 %s928_s18, 4  ;;  %s1292_s27 = scalar_lea.hbm %s1861_s2, 256  ;;  %s932_s21 = int_to_ptr.hbm [resolvable:$true] %s931_s21 }
  0x33   : > { %v212_v11 = vld [vmem:[#allocation5 + $0x60] sm:$0xff]  ;;  %v209_v12 = vld [vmem:[#allocation5 + $0x48] sm:$0xff]  ;;  %v206_v13 = vld [vmem:[#allocation5 + $0x30] sm:$0xff]  ;;  %s1286_s24 = sshra.s32 %s932_s21, 4  ;;  %s1287_s24 = int_to_ptr.hbm [resolvable:$true] %s1286_s24 }
  0x34   : > { %250 = vmatpush.msra.mxu0 %v239_v2  ;;  %1055 = vmatpush.msra.mxu2 %v239_v2  ;;  %v203_v14 = vld [vmem:[#allocation5 + $0x18] sm:$0xff]  ;;  %v200_v15 = vld [vmem:[#allocation5] sm:$0xff]  ;;  %v1482_v17 = vld [vmem:[%s1467_s14 + $0x8] sm:$0xff]  ;;  %s1288_s25 = scalar_lea.hbm %s1287_s24, 128  ;;  %p1293_p11 = scmp.lt.s32.totalorder %s1287_s24, %s1861_s2 }
  0x35   : > { %v1478_v16 = vld [vmem:[%s1467_s14] sm:$0xff]  ;;  %v1486_v18 = vld [vmem:[%s1467_s14 + $0x10] sm:$0xff]  ;;  %v1494_v20 = vld [vmem:[%s1467_s14 + $0x18] sm:$0xff]  ;;  %p1289_p1 = scmp.ne.s32.totalorder %s1287_s24, %s1288_s25  ;;  %p1294_p9 = scmp.lt.s32.totalorder %s1292_s27, %s1288_s25 }
  0x36   : > { %251 = vmatpush.msra.mxu0 %v236_v3  ;;  %1056 = vmatpush.msra.mxu2 %v236_v3  ;;  %v1490_v19 = vld [vmem:[%s1467_s14 + $0x60] sm:$0xff]  ;;  %v246_v21 = vld [vmem:[#allocation5 + $0x170] sm:$0xff]  ;;  %v243_v22 = vld [vmem:[#allocation5 + $0x158] sm:$0xff] }
  0x37   : > { %313 = vmatpush.msra.mxu1 %v246_v21  ;;  %v240_v23 = vld [vmem:[#allocation5 + $0x140] sm:$0xff]  ;;  %v1498_v24 = vld [vmem:[%s1467_s14 + $0x68] sm:$0xff]  ;;  %1069 = vmatpush.msra.mxu3 %v246_v21  ;;  %v234_v27 = vld [vmem:[#allocation5 + $0x110] sm:$0xff]  ;;  %p1290_p4 = pnand %p1289_p1, %p1433_p7  ;;  %p1295_p2 = por %p1294_p9, %p1293_p11 }
  0x38   : > { %252 = vmatpush.msra.mxu0 %v233_v4  ;;  %1057 = vmatpush.msra.mxu2 %v233_v4  ;;  %v237_v25 = vld [vmem:[#allocation5 + $0x128] sm:$0xff]  ;;  %v1502_v26 = vld [vmem:[%s1467_s14 + $0x20] sm:$0xff]  ;;  %v231_v28 = vld [vmem:[#allocation5 + $0xf8] sm:$0xff] }
  0x39   : > { %314 = vmatpush.msra.mxu1 %v243_v22  ;;  %1070 = vmatpush.msra.mxu3 %v243_v22  ;;  %v1505_v29 = vld [vmem:[%s1467_s14 + $0x70] sm:$0xff]  ;;  %v228_v30 = vld [vmem:[#allocation5 + $0xe0] sm:$0xff]  ;;  %v225_v31 = vld [vmem:[#allocation5 + $0xc8] sm:$0xff]  ;;  %p1291_p8 = pneg %p1290_p4 }
  0x3a   : > { %253 = vmatpush.msra.mxu0 %v230_v5  ;;  %1058 = vmatpush.msra.mxu2 %v230_v5  ;;  %v1510_v32 = vld [vmem:[%s1467_s14 + $0x28] sm:$0xff]  ;;  %v222_v33 = vld [vmem:[#allocation5 + $0xb0] sm:$0xff]  ;;  %v219_v34 = vld [vmem:[#allocation5 + $0x98] sm:$0xff] }
  0x3b   : > { %315 = vmatpush.msra.mxu1 %v240_v23  ;;  %1071 = vmatpush.msra.mxu3 %v240_v23  ;;  %v1513_v35 = vld [vmem:[%s1467_s14 + $0x78] sm:$0xff]  ;;  %v216_v36 = vld [vmem:[#allocation5 + $0x80] sm:$0xff]  ;;  %v213_v37 = vld [vmem:[#allocation5 + $0x68] sm:$0xff]  ;;  %p1296_p10 = pnand %p1295_p2, %p1291_p8 }
  0x3c   : > { %254 = vmatpush.msra.mxu0 %v227_v6  ;;  %1059 = vmatpush.msra.mxu2 %v227_v6  ;;  %v1518_v38 = vld [vmem:[%s1467_s14 + $0x30] sm:$0xff]  ;;  %v207_v40 = vld [vmem:[#allocation5 + $0x38] sm:$0xff]  ;;  %v204_v41 = vld [vmem:[#allocation5 + $0x20] sm:$0xff] }
  0x3d   : > { %316 = vmatpush.msra.mxu1 %v237_v25  ;;  %1072 = vmatpush.msra.mxu3 %v237_v25  ;;  %v210_v39 = vld [vmem:[#allocation5 + $0x50] sm:$0xff]  ;;  %v201_v42 = vld [vmem:[#allocation5 + $0x8] sm:$0xff]  ;;  %v1522_v43 = vld [vmem:[%s1467_s14 + $0x38] sm:$0xff] }
  0x3e   : > { %255 = vmatpush.msra.mxu0 %v224_v7  ;;  %1060 = vmatpush.msra.mxu2 %v224_v7  ;;  %v1528_v44 = vld [vmem:[%s1467_s14 + $0x40] sm:$0xff]  ;;  %v1534_v45 = vld [vmem:[%s1467_s14 + $0x48] sm:$0xff]  ;;  %v1540_v46 = vld [vmem:[%s1467_s14 + $0x50] sm:$0xff] }
  0x3f   : > { %317 = vmatpush.msra.mxu1 %v234_v27  ;;  %1073 = vmatpush.msra.mxu3 %v234_v27  ;;  %v1546_v47 = vld [vmem:[%s1467_s14 + $0x58] sm:$0xff]  ;;  %v244_v63 = vld [vmem:[#allocation5 + $0x160] sm:$0xff]  ;;  %v241_v1 = vld [vmem:[#allocation5 + $0x148] sm:$0xff] }
  0x40   : > { %256 = vmatpush.msra.mxu0 %v221_v8  ;;  %1061 = vmatpush.msra.mxu2 %v221_v8  ;;  %v247_v62 = vld [vmem:[#allocation5 + $0x178] sm:$0xff]  ;;  %v238_v2 = vld [vmem:[#allocation5 + $0x130] sm:$0xff]  ;;  %v232_v6 = vld [vmem:[#allocation5 + $0x100] sm:$0xff] }
  0x41   : > { %318 = vmatpush.msra.mxu1 %v231_v28  ;;  %1074 = vmatpush.msra.mxu3 %v231_v28  ;;  %v235_v3 = vld [vmem:[#allocation5 + $0x118] sm:$0xff]  ;;  %v229_v7 = vld [vmem:[#allocation5 + $0xe8] sm:$0xff]  ;;  %v226_v8 = vld [vmem:[#allocation5 + $0xd0] sm:$0xff] }
  0x42   : > { %257 = vmatpush.msra.mxu0 %v218_v9  ;;  %1062 = vmatpush.msra.mxu2 %v218_v9  ;;  %v208_v22 = vld [vmem:[#allocation5 + $0x40] sm:$0xff]  ;;  %v205_v25 = vld [vmem:[#allocation5 + $0x28] sm:$0xff]  ;;  %v202_v27 = vld [vmem:[#allocation5 + $0x10] sm:$0xff] }
  0x43   : > { %319 = vmatpush.msra.mxu1 %v228_v30  ;;  %1075 = vmatpush.msra.mxu3 %v228_v30 }
  0x44   : > { %258 = vmatpush.msra.mxu0 %v215_v10  ;;  %1063 = vmatpush.msra.mxu2 %v215_v10  ;;  %v223_v10 = vld [vmem:[#allocation5 + $0xb8] sm:$0xff] }
  0x45   : > { %320 = vmatpush.msra.mxu1 %v225_v31  ;;  %1076 = vmatpush.msra.mxu3 %v225_v31 }
  0x46   : > { %259 = vmatpush.msra.mxu0 %v212_v11  ;;  %1064 = vmatpush.msra.mxu2 %v212_v11  ;;  %v220_v11 = vld [vmem:[#allocation5 + $0xa0] sm:$0xff] }
  0x47   : > { %321 = vmatpush.msra.mxu1 %v222_v33  ;;  %1077 = vmatpush.msra.mxu3 %v222_v33 }
  0x48   : > { %260 = vmatpush.msra.mxu0 %v209_v12  ;;  %1065 = vmatpush.msra.mxu2 %v209_v12 }
  0x49   : > { %322 = vmatpush.msra.mxu1 %v219_v34  ;;  %1078 = vmatpush.msra.mxu3 %v219_v34 }
  0x4a   : > { %261 = vmatpush.msra.mxu0 %v206_v13  ;;  %1066 = vmatpush.msra.mxu2 %v206_v13  ;;  %v217_v13 = vld [vmem:[#allocation5 + $0x88] sm:$0xff] }
  0x4b   : > { %323 = vmatpush.msra.mxu1 %v216_v36  ;;  %1079 = vmatpush.msra.mxu3 %v216_v36  ;;  %v541_v36 = vlaneseq }
  0x4c   : > { %262 = vmatpush.msra.mxu0 %v203_v14  ;;  %1067 = vmatpush.msra.mxu2 %v203_v14  ;;  %v214_v14 = vld [vmem:[#allocation5 + $0x70] sm:$0xff] }
  0x4d   : > { %324 = vmatpush.msra.mxu1 %v213_v37  ;;  %1080 = vmatpush.msra.mxu3 %v213_v37  ;;  %v1571_v37 = vshrl.u32 %v541_v36, 7 }
  0x4e   : > { %263 = vmatpush.msra.mxu0 %v200_v15  ;;  %1068 = vmatpush.msra.mxu2 %v200_v15  ;;  %v211_v15 = vld [vmem:[#allocation5 + $0x58] sm:$0xff] }
  0x4f   : > { %264 = vmatmul.f32.vlgmr.msra.gmra.mxu0 %v1478_v16  ;;  %300 = vmatmul.f32.vlgmr.msra.gmra.mxu2 %v1490_v19 }
  0x50   : > { %325 = vmatpush.msra.mxu1 %v210_v39  ;;  %1081 = vmatpush.msra.mxu3 %v210_v39 }
  0x51   : > { %378 = vmatpush.msrb.mxu2 %v247_v62  ;;  %v545_v62 = vadd.s32 24, %v1571_v37 }
  0x52   : > { %326 = vmatpush.msra.mxu1 %v207_v40  ;;  %1082 = vmatpush.msra.mxu3 %v207_v40 }
  0x53   : > { %379 = vmatpush.msrb.mxu2 %v244_v63 }
  0x54   : > { %327 = vmatpush.msra.mxu1 %v204_v41  ;;  %1083 = vmatpush.msra.mxu3 %v204_v41  ;;  %v543_v41 = vadd.s32 8, %v1571_v37 }
  0x55   : > { %380 = vmatpush.msrb.mxu2 %v241_v1 }
  0x56   : > { %328 = vmatpush.msra.mxu1 %v201_v42  ;;  %1084 = vmatpush.msra.mxu3 %v201_v42 }
  0x57   : > { %267 = vmatmul.f32.gmra.mxu0 %v1482_v17  ;;  %303 = vmatmul.f32.gmra.mxu2 %v1498_v24 }
  0x58   : > { %329 = vmatmul.f32.vlgmr.msra.gmra.mxu1 %v1478_v16  ;;  %365 = vmatmul.f32.vlgmr.msra.gmra.mxu3 %v1490_v19 }
  0x59   : > { %381 = vmatpush.msrb.mxu2 %v238_v2 }
  0x5b   : > { %382 = vmatpush.msrb.mxu2 %v235_v3 }
  0x5d   : > { %383 = vmatpush.msrb.mxu2 %v232_v6 }
  0x5f   : > { %270 = vmatmul.f32.gmra.mxu0 %v1486_v18  ;;  %306 = vmatmul.f32.gmra.mxu2 %v1505_v29 }
  0x60   : > { %332 = vmatmul.f32.gmra.mxu1 %v1482_v17  ;;  %368 = vmatmul.f32.gmra.mxu3 %v1498_v24 }
  0x61   : > { %384 = vmatpush.msrb.mxu2 %v229_v7 }
  0x63   : > { %385 = vmatpush.msrb.mxu2 %v226_v8 }
  0x65   : > { %386 = vmatpush.msrb.mxu2 %v223_v10 }
  0x67   : > { %273 = vmatmul.f32.gmra.mxu0 %v1494_v20  ;;  %309 = vmatmul.f32.gmra.mxu2 %v1513_v35 }
  0x68   : > { %335 = vmatmul.f32.gmra.mxu1 %v1486_v18  ;;  %371 = vmatmul.f32.gmra.mxu3 %v1505_v29 }
  0x69   : > { %387 = vmatpush.msrb.mxu2 %v220_v11 }
  0x6b   : > { %388 = vmatpush.msrb.mxu2 %v217_v13 }
  0x6d   : > { %389 = vmatpush.msrb.mxu2 %v214_v14 }
  0x6f   : > { %276 = vmatmul.f32.gmra.mxu0 %v1502_v26  ;;  %390 = vmatpush.msrb.mxu2 %v211_v15 }
  0x70   : > { %338 = vmatmul.f32.gmra.mxu1 %v1494_v20  ;;  %374 = vmatmul.f32.gmra.mxu3 %v1513_v35 }
  0x71   : > { %391 = vmatpush.msrb.mxu2 %v208_v22 }
  0x73   : > { %392 = vmatpush.msrb.mxu2 %v205_v25 }
  0x75   : > { %393 = vmatpush.msrb.mxu2 %v202_v27  ;;  %v547_v27 = vadd.s32 40, %v1571_v37 }
  0x76   : > { %394 = vmatmul.f32.vlgmr.msrb.gmra.mxu2 %v1478_v16 }
  0x77   : > { %279 = vmatmul.f32.gmra.mxu0 %v1510_v32 }
  0x78   : > { %341 = vmatmul.f32.gmra.mxu1 %v1502_v26 }
  0x7e   : > { %397 = vmatmul.f32.gmra.mxu2 %v1482_v17 }
  0x7f   : > { %282 = vmatmul.f32.gmra.mxu0 %v1518_v38 }
  0x80   : > { %344 = vmatmul.f32.gmra.mxu1 %v1510_v32 }
  0x86   : > { %400 = vmatmul.f32.gmra.mxu2 %v1486_v18 }
  0x87   : > { %285 = vmatmul.f32.gmra.mxu0 %v1522_v43 }
  0x88   : > { %347 = vmatmul.f32.gmra.mxu1 %v1518_v38 }
  0x8e   : > { %403 = vmatmul.f32.gmra.mxu2 %v1494_v20 }
  0x8f   : > { %288 = vmatmul.f32.gmra.mxu0 %v1528_v44 }
  0x90   : > { %350 = vmatmul.f32.gmra.mxu1 %v1522_v43 }
  0x96   : > { %406 = vmatmul.f32.gmra.mxu2 %v1502_v26 }
  0x97   : > { %291 = vmatmul.f32.gmra.mxu0 %v1534_v45 }
  0x98   : > { %353 = vmatmul.f32.gmra.mxu1 %v1528_v44 }
  0x9e   : > { %409 = vmatmul.f32.gmra.mxu2 %v1510_v32 }
  0x9f   : > { %294 = vmatmul.f32.gmra.mxu0 %v1540_v46 }
  0xa0   : > { %356 = vmatmul.f32.gmra.mxu1 %v1534_v45 }
  0xa6   : > { %412 = vmatmul.f32.gmra.mxu2 %v1518_v38  ;;  %v1573_v38 = vand.u32 127, %v541_v36 }
  0xa7   : > { %297 = vmatmul.f32.gmra.mxu0 %v1546_v47 }
  0xa8   : > { %359 = vmatmul.f32.gmra.mxu1 %v1540_v46  ;;  %vm552_vm0 = vcmp.ge.s32.totalorder %v1571_v37, %v1573_v38  ;;  %vm553_vm2 = vcmp.ge.s32.totalorder %v543_v41, %v1573_v38  ;;  %vm555_vm4 = vcmp.ge.s32.totalorder %v545_v62, %v1573_v38  ;;  %vm557_vm6 = vcmp.ge.s32.totalorder %v547_v27, %v1573_v38 }
  0xae   : > { %415 = vmatmul.f32.gmra.mxu2 %v1522_v43 }
  0xb0   : > { %362 = vmatmul.f32.gmra.mxu1 %v1546_v47 }
  0xb6   : > { %418 = vmatmul.f32.gmra.mxu2 %v1528_v44 }
  0xbe   : > { %421 = vmatmul.f32.gmra.mxu2 %v1534_v45  ;;  %v544_v45 = vadd.s32 16, %v1571_v37 }
  0xc0   : > { %vm554_vm3 = vcmp.ge.s32.totalorder %v544_v45, %v1573_v38 }
  0xc6   : > { %424 = vmatmul.f32.gmra.mxu2 %v1540_v46 }
  0xcc   : > { %v265_v48 = vpop.f32.mrf.mxu0 }
  0xce   : > { %427 = vmatmul.f32.gmra.mxu2 %v1546_v47 }
  0xd2   : > { %v301_v55 = vpop.f32.mrf.mxu2 }
  0xd4   : > { %v268_v49 = vpop.f32.mrf.mxu0 }
  0xd5   : > { %v330_v58 = vpop.f32.mrf.mxu1 }
  0xd6   : > { %430 = vmatmul.f32.gmra.mxu2 %v1490_v19 }
  0xda   : > { %v304_v57 = vpop.f32.mrf.mxu2 }
  0xdb   : > { %v366_v20 = vpop.f32.mrf.mxu3 }
  0xdc   : > { %v271_v50 = vpop.f32.mrf.mxu0 }
  0xdd   : > { %v333_v61 = vpop.f32.mrf.mxu1 }
  0xde   : > { %433 = vmatmul.f32.gmra.mxu2 %v1498_v24 }
  0xe2   : > { %v307_v60 = vpop.f32.mrf.mxu2 }
  0xe3   : > { %v369_v26 = vpop.f32.mrf.mxu3 }
  0xe4   : > { %v274_v51 = vpop.f32.mrf.mxu0 }
  0xe5   : > { %v336_v5 = vpop.f32.mrf.mxu1 }
  0xe6   : > { %436 = vmatmul.f32.gmra.mxu2 %v1505_v29 }
  0xea   : > { %v310_v4 = vpop.f32.mrf.mxu2 }
  0xeb   : > { %v372_v32 = vpop.f32.mrf.mxu3 }
  0xec   : > { %v277_v52 = vpop.f32.mrf.mxu0 }
  0xed   : > { %v339_v12 = vpop.f32.mrf.mxu1 }
  0xee   : > { %439 = vmatmul.f32.gmra.mxu2 %v1513_v35 }
  0xf3   : > { %v375_v34 = vpop.f32.mrf.mxu3 }
  0xf4   : > { %v280_v53 = vpop.f32.mrf.mxu0 }
  0xf5   : > { %v342_v23 = vpop.f32.mrf.mxu1 }
  0xfc   : > { %v283_v54 = vpop.f32.mrf.mxu0 }
  0xfd   : > { %v345_v28 = vpop.f32.mrf.mxu1 }
 0x104   : > { %v286_v56 = vpop.f32.mrf.mxu0 }
 0x105   : > { %451 = vmatpush.xpose.msrb.mxu3 %v286_v56  ;;  %v348_v30 = vpop.f32.mrf.mxu1 }
 0x109   : > { %452 = vmatpush.xpose.msrb.mxu3 %v283_v54 }
 0x10c   : > { %v289_v59 = vpop.f32.mrf.mxu0 }
 0x10d   : > { %453 = vmatpush.xpose.msrb.mxu3 %v280_v53  ;;  %v351_v31 = vpop.f32.mrf.mxu1 }
 0x111   : > { %454 = vmatpush.xpose.msrb.mxu3 %v277_v52 }
 0x114   : > { %v292_v0 = vpop.f32.mrf.mxu0 }
 0x115   : > { %455 = vmatpush.xpose.msrb.mxu3 %v274_v51  ;;  %v354_v33 = vpop.f32.mrf.mxu1 }
 0x119   : > { %456 = vmatpush.xpose.msrb.mxu3 %v271_v50 }
 0x11c   : > { %v295_v9 = vpop.f32.mrf.mxu0 }
 0x11d   : > { %457 = vmatpush.xpose.msrb.mxu3 %v268_v49  ;;  %v357_v16 = vpop.f32.mrf.mxu1  ;;  %v395_v49 = vpop.f32.mrf.mxu2 }
 0x121   : > { %458 = vmatpush.xpose.msrb.mxu3 %v265_v48 }
 0x124   : > { %459 = vmatmul.f32.vlgmr.msrb.gmra.mxu3 %v330_v58  ;;  %v298_v21 = vpop.f32.mrf.mxu0 }
 0x125   : > { %492 = vmatpush.xpose.msra.mxu3 %v310_v4  ;;  %v360_v17 = vpop.f32.mrf.mxu1  ;;  %v398_v51 = vpop.f32.mrf.mxu2 }
 0x129   : > { %493 = vmatpush.xpose.msra.mxu3 %v307_v60 }
 0x12c   : > { %462 = vmatmul.f32.gmra.mxu3 %v333_v61 }
 0x12d   : > { %494 = vmatpush.xpose.msra.mxu3 %v304_v57  ;;  %v363_v18 = vpop.f32.mrf.mxu1  ;;  %v401_v53 = vpop.f32.mrf.mxu2 }
 0x131   : > { %495 = vmatpush.xpose.msra.mxu3 %v301_v55 }
 0x134   : > { %465 = vmatmul.f32.gmra.mxu3 %v336_v5 }
 0x135   : > { %496 = vmatpush.xpose.msra.mxu3 %v298_v21  ;;  %v404_v55 = vpop.f32.mrf.mxu2 }
 0x139   : > { %497 = vmatpush.xpose.msra.mxu3 %v295_v9 }
 0x13c   : > { %468 = vmatmul.f32.gmra.mxu3 %v339_v12  ;;  %v546_v12 = vadd.s32 32, %v1571_v37 }
 0x13d   : > { %498 = vmatpush.xpose.msra.mxu3 %v292_v0  ;;  %v407_v57 = vpop.f32.mrf.mxu2 }
 0x13e   : > { %vm556_vm5 = vcmp.ge.s32.totalorder %v546_v12, %v1573_v38 }
 0x141   : > { %499 = vmatpush.xpose.msra.mxu3 %v289_v59 }
 0x144   : > { %471 = vmatmul.f32.gmra.mxu3 %v342_v23 }
 0x145   : > { %v410_v59 = vpop.f32.mrf.mxu2 }
 0x14c   : > { %474 = vmatmul.f32.gmra.mxu3 %v345_v28 }
 0x14d   : > { %v413_v1 = vpop.f32.mrf.mxu2 }
 0x154   : > { %477 = vmatmul.f32.gmra.mxu3 %v348_v30 }
 0x155   : > { %v416_v9 = vpop.f32.mrf.mxu2 }
 0x156   : > { %801 = vmatpush.msrb.mxu0 %v416_v9 }
 0x158   : > { %802 = vmatpush.msrb.mxu0 %v413_v1 }
 0x15a   : > { %803 = vmatpush.msrb.mxu0 %v410_v59 }
 0x15c   : > { %480 = vmatmul.f32.gmra.mxu3 %v351_v31  ;;  %804 = vmatpush.msrb.mxu0 %v407_v57 }
 0x15d   : > { %v1632_v15 = vpop.f32.mrf.mxu2 }
 0x15e   : > { %805 = vmatpush.msrb.mxu0 %v404_v55 }
 0x160   : > { %806 = vmatpush.msrb.mxu0 %v401_v53 }
 0x162   : > { %807 = vmatpush.msrb.mxu0 %v398_v51 }
 0x164   : > { %500 = vmatmul.f32.vlgmr.msra.gmra.mxu3 %v354_v33  ;;  %808 = vmatpush.msrb.mxu0 %v395_v49  ;;  %v549_v49 = vadd.s32 56, %v1571_v37 }
 0x166   : > { %vm559_vm8 = vcmp.ge.s32.totalorder %v549_v49, %v1573_v38 }
 0x16c   : > { %503 = vmatmul.f32.gmra.mxu3 %v357_v16  ;;  %v422_v16 = vpop.f32.mrf.mxu2 }
 0x174   : > { %506 = vmatmul.f32.gmra.mxu3 %v360_v17 }
 0x17c   : > { %509 = vmatmul.f32.gmra.mxu3 %v363_v18 }
 0x184   : > { %512 = vmatmul.f32.gmra.mxu3 %v366_v20 }
 0x18c   : > { %515 = vmatmul.f32.gmra.mxu3 %v369_v26  ;;  %v548_v26 = vadd.s32 48, %v1571_v37 }
 0x18e   : > { %vm558_vm7 = vcmp.ge.s32.totalorder %v548_v26, %v1573_v38 }
 0x194   : > { %518 = vmatmul.f32.gmra.mxu3 %v372_v32 }
 0x19c   : > { %521 = vmatmul.f32.gmra.mxu3 %v375_v34 }
 0x1a7   : > { %v460_v39 = vpop.f32.mrf.mxu3 }
 0x1a8   : > { %v525_v40 = vmul.f32 0.09128709, %v460_v39 }
 0x1aa   : > { %v1581_v19 = vsel %vm552_vm0, %v525_v40, -inf  ;;  %v425_v40 = vpop.f32.mrf.mxu2 }
 0x1ab   : > { %v593_v24 = vsel %vm592_vm1, %v1581_v19, -inf }
 0x1ac   : > { %594 = vmax.xlane.f32.xlu0 %v593_v24 }
 0x1af   : > { %v463_v42 = vpop.f32.mrf.mxu3 }
 0x1b0   : > { %v526_v43 = vmul.f32 0.09128709, %v463_v42 }
 0x1b2   : > { %v1590_v29 = vsel %vm553_vm2, %v526_v43, -inf }
 0x1b3   : > { %v596_v44 = vsel %vm592_vm1, %v1590_v29, -inf }
 0x1b4   : > { %597 = vmax.xlane.f32.xlu1 %v596_v44 }
 0x1b7   : > { %v466_v46 = vpop.f32.mrf.mxu3 }
 0x1b8   : > { %v527_v47 = vmul.f32 0.09128709, %v466_v46  ;;  %v428_v46 = vpop.f32.mrf.mxu2 }
 0x1ba   : > { %v1598_v48 = vsel %vm554_vm3, %v527_v47, -inf }
 0x1bb   : > { %v599_v35 = vsel %vm592_vm1, %v1598_v48, -inf }
 0x1bc   : > { %600 = vmax.xlane.f32.xlu2 %v599_v35 }
 0x1bf   : > { %v469_v50 = vpop.f32.mrf.mxu3 }
 0x1c0   : > { %v528_v2 = vmul.f32 0.09128709, %v469_v50  ;;  %v431_v53 = vpop.f32.mrf.mxu2 }
 0x1c2   : > { %v1615_v5 = vsel %vm555_vm4, %v528_v2, -inf }
 0x1c3   : > { %v602_v7 = vsel %vm592_vm1, %v1615_v5, -inf }
 0x1c7   : > { %v472_v52 = vpop.f32.mrf.mxu3 }
 0x1c8   : > { %v529_v21 = vmul.f32 0.09128709, %v472_v52  ;;  %v434_v59 = vpop.f32.mrf.mxu2 }
 0x1ca   : > { %v1637_v25 = vsel %vm556_vm5, %v529_v21, -inf }
 0x1cb   : > { %v605_v30 = vsel %vm592_vm1, %v1637_v25, -inf }
 0x1cf   : > { %v475_v54 = vpop.f32.mrf.mxu3 }
 0x1d0   : > { %v530_v33 = vmul.f32 0.09128709, %v475_v54 }
 0x1d2   : > { %v1651_v20 = vsel %vm557_vm6, %v530_v33, -inf }
 0x1d3   : > { %v608_v34 = vsel %vm592_vm1, %v1651_v20, -inf }
 0x1d7   : > { %v478_v56 = vpop.f32.mrf.mxu3 }
 0x1d8   : > { %v531_v39 = vmul.f32 0.09128709, %v478_v56 }
 0x1da   : > { %v1663_v42 = vsel %vm558_vm7, %v531_v39, -inf }
 0x1db   : > { %v611_v44 = vsel %vm592_vm1, %v1663_v42, -inf }
 0x1df   : > { %v1602_v58 = vpop.f32.mrf.mxu3 }
 0x1e0   : > { %v532_v52 = vmul.f32 0.09128709, %v1602_v58 }
 0x1e2   : > { %v1683_v56 = vsel %vm559_vm8, %v532_v52, -inf }
 0x1e3   : > { %v614_v37 = vsel %vm592_vm1, %v1683_v56, -inf }
 0x1e7   : > { %v501_v60 = vpop.f32.mrf.mxu3 }
 0x1e8   : > { %v533_v61 = vmul.f32 0.09128709, %v501_v60 }
 0x1ea   : > { %v1608_v63 = vsel %vm552_vm0, %v533_v61, -inf }
 0x1eb   : > { %v617_v0 = vsel %vm592_vm1, %v1608_v63, -inf }
 0x1ec   : > { %618 = vmax.xlane.f32.xlu0 %v617_v0 }
 0x1ef   : > { %v504_v3 = vpop.f32.mrf.mxu3 }
 0x1f0   : > { %v534_v4 = vmul.f32 0.09128709, %v504_v3 }
 0x1f2   : > { %v1619_v6 = vsel %vm553_vm2, %v534_v4, -inf }
 0x1f3   : > { %v620_v8 = vsel %vm592_vm1, %v1619_v6, -inf }
 0x1f4   : > { %603 = vmax.xlane.f32.xlu0 %v602_v7  ;;  %621 = vmax.xlane.f32.xlu1 %v620_v8 }
 0x1f7   : > { %v507_v10 = vpop.f32.mrf.mxu3 }
 0x1f8   : > { %v535_v11 = vmul.f32 0.09128709, %v507_v10 }
 0x1fa   : > { %v1628_v13 = vsel %vm554_vm3, %v535_v11, -inf }
 0x1fb   : > { %v623_v14 = vsel %vm592_vm1, %v1628_v13, -inf }
 0x1fc   : > { %624 = vmax.xlane.f32.xlu2 %v623_v14 }
 0x1ff   : > { %v510_v22 = vpop.f32.mrf.mxu3 }
 0x200   : > { %v536_v23 = vmul.f32 0.09128709, %v510_v22 }
 0x202   : > { %v1642_v28 = vsel %vm555_vm4, %v536_v23, -inf }
 0x203   : > { %v626_v31 = vsel %vm592_vm1, %v1642_v28, -inf }
 0x204   : > { %606 = vmax.xlane.f32.xlu2 %v605_v30  ;;  %627 = vmax.xlane.f32.xlu1 %v626_v31 }
 0x207   : > { %v513_v17 = vpop.f32.mrf.mxu3 }
 0x208   : > { %v537_v18 = vmul.f32 0.09128709, %v513_v17 }
 0x20a   : > { %v1656_v32 = vsel %vm556_vm5, %v537_v18, -inf }
 0x20b   : > { %v629_v36 = vsel %vm592_vm1, %v1656_v32, -inf }
 0x20c   : > { %609 = vmax.xlane.f32.xlu1 %v608_v34  ;;  %630 = vmax.xlane.f32.xlu0 %v629_v36 }
 0x20f   : > { %v516_v24 = vpop.f32.mrf.mxu3 }
 0x210   : > { %v538_v41 = vmul.f32 0.09128709, %v516_v24 }
 0x212   : > { %v1667_v43 = vsel %vm557_vm6, %v538_v41, -inf }
 0x213   : > { %v632_v45 = vsel %vm592_vm1, %v1667_v43, -inf }
 0x214   : > { %612 = vmax.xlane.f32.xlu0 %v611_v44  ;;  %633 = vmax.xlane.f32.xlu2 %v632_v45 }
 0x217   : > { %v519_v47 = vpop.f32.mrf.mxu3 }
 0x218   : > { %v539_v35 = vmul.f32 0.09128709, %v519_v47 }
 0x21a   : > { %v1674_v50 = vsel %vm558_vm7, %v539_v35, -inf }
 0x21b   : > { %v635_v51 = vsel %vm592_vm1, %v1674_v50, -inf }
 0x21c   : > { %636 = vmax.xlane.f32.xlu1 %v635_v51 }
 0x21f   : > { %v595_v54 = vpop.xlane.xlu0 %594  ;;  %v522_v60 = vpop.f32.mrf.mxu3 }
 0x220   : > { %v641_v55 = vsub.f32 %v1581_v19, %v595_v54  ;;  %v540_v62 = vmul.f32 0.09128709, %v522_v60  ;;  %v437_v19 = vpop.f32.mrf.mxu2 }
 0x222   : > { %v657_v57 = vmul.f32 1.442695, %v641_v55  ;;  %v1694_v2 = vsel %vm559_vm8, %v540_v62, -inf }
 0x223   : > { %v638_v4 = vsel %vm592_vm1, %v1694_v2, -inf }
 0x224   : > { %1148 = vpow2.f32 %v657_v57  ;;  %615 = vmax.xlane.f32.xlu1 %v614_v37 }
 0x227   : > { %v598_v38 = vpop.xlane.xlu1 %597 }
 0x228   : > { %v440_v7 = vpop.f32.mrf.mxu2  ;;  %v642_v11 = vsub.f32 %v1590_v29, %v598_v38 }
 0x229   : > { %866 = vmatpush.msrb.mxu1 %v440_v7 }
 0x22a   : > { %v1687_v58 = vpop.eup %1148  ;;  %v659_v14 = vmul.f32 1.442695, %v642_v11 }
 0x22b   : > { %v689_v61 = vsel %vm592_vm1, %v1687_v58, 0.0  ;;  %867 = vmatpush.msrb.mxu1 %v437_v19 }
 0x22c   : > { %690 = vadd.xlane.f32.xlu2 %v689_v61 }
 0x22d   : > { %868 = vmatpush.msrb.mxu1 %v434_v59 }
 0x22f   : > { %v601_v0 = vpop.xlane.xlu2 %600  ;;  %869 = vmatpush.msrb.mxu1 %v431_v53 }
 0x230   : > { %v643_v1 = vsub.f32 %v1598_v48, %v601_v0 }
 0x231   : > { %870 = vmatpush.msrb.mxu1 %v428_v46 }
 0x232   : > { %v661_v3 = vmul.f32 1.442695, %v643_v1 }
 0x233   : > { %871 = vmatpush.msrb.mxu1 %v425_v40 }
 0x234   : > { %1150 = vpow2.f32 %v661_v3  ;;  %639 = vmax.xlane.f32.xlu2 %v638_v4 }
 0x235   : > { %872 = vmatpush.msrb.mxu1 %v422_v16 }
 0x237   : > { %873 = vmatpush.msrb.mxu1 %v1632_v15 }
 0x23a   : > { %v1698_v8 = vpop.eup %1150 }
 0x23b   : > { %v695_v9 = vsel %vm592_vm1, %v1698_v8, 0.0 }
 0x23c   : > { %696 = vadd.xlane.f32.xlu2 %v695_v9 }
 0x25f   : > { %v619_v48 = vpop.xlane.xlu0 %618 }
 0x260   : > { %v649_v10 = vsub.f32 %v1608_v63, %v619_v48 }
 0x262   : > { %v673_v12 = vmul.f32 1.442695, %v649_v10 }
 0x264   : > { %1152 = vpow2.f32 %v673_v12 }
 0x265   : > { %1154 = vpow2.f32 %v659_v14 }
 0x267   : > { %v622_v21 = vpop.xlane.xlu1 %621  ;;  %v604_v22 = vpop.xlane.xlu0 %603 }
 0x268   : > { %v650_v23 = vsub.f32 %v1619_v6, %v622_v21  ;;  %v644_v31 = vsub.f32 %v1615_v5, %v604_v22 }
 0x26a   : > { %v1706_v27 = vpop.eup %1152  ;;  %v675_v30 = vmul.f32 1.442695, %v650_v23  ;;  %v663_v63 = vmul.f32 1.442695, %v644_v31 }
 0x26b   : > { %v713_v15 = vsel %vm592_vm1, %v1706_v27, 0.0  ;;  %v1711_v33 = vpop.eup %1154 }
 0x26c   : > { %714 = vadd.xlane.f32.xlu0 %v713_v15  ;;  %1156 = vpow2.f32 %v675_v30  ;;  %v692_v6 = vsel %vm592_vm1, %v1711_v33, 0.0 }
 0x26d   : > { %1158 = vpow2.f32 %v663_v63 }
 0x26f   : > { %v625_v29 = vpop.xlane.xlu2 %624 }
 0x270   : > { %v651_v16 = vsub.f32 %v1628_v13, %v625_v29 }
 0x272   : > { %v677_v17 = vmul.f32 1.442695, %v651_v16  ;;  %v1714_v18 = vpop.eup %1156 }
 0x273   : > { %v716_v5 = vsel %vm592_vm1, %v1714_v18, 0.0  ;;  %v1722_v13 = vpop.eup %1158 }
 0x274   : > { %1160 = vpow2.f32 %v677_v17  ;;  %693 = vadd.xlane.f32.xlu0 %v692_v6  ;;  %717 = vadd.xlane.f32.xlu1 %v716_v5  ;;  %v698_v45 = vsel %vm592_vm1, %v1722_v13, 0.0 }
 0x277   : > { %v607_v26 = vpop.xlane.xlu2 %606  ;;  %v628_v34 = vpop.xlane.xlu1 %627 }
 0x278   : > { %v645_v36 = vsub.f32 %v1637_v25, %v607_v26  ;;  %v652_v39 = vsub.f32 %v1642_v28, %v628_v34 }
 0x27a   : > { %v1724_v40 = vpop.eup %1160  ;;  %v665_v24 = vmul.f32 1.442695, %v645_v36  ;;  %v679_v41 = vmul.f32 1.442695, %v652_v39 }
 0x27b   : > { %v719_v44 = vsel %vm592_vm1, %v1724_v40, 0.0 }
 0x27c   : > { %1162 = vpow2.f32 %v665_v24  ;;  %720 = vadd.xlane.f32.xlu0 %v719_v44  ;;  %699 = vadd.xlane.f32.xlu1 %v698_v45 }
 0x27d   : > { %1164 = vpow2.f32 %v679_v41 }
 0x27f   : > { %v610_v46 = vpop.xlane.xlu1 %609  ;;  %v631_v25 = vpop.xlane.xlu0 %630 }
 0x280   : > { %v646_v28 = vsub.f32 %v1651_v20, %v610_v46  ;;  %v653_v47 = vsub.f32 %v1656_v32, %v631_v25 }
 0x282   : > { %v1732_v35 = vpop.eup %1162  ;;  %v667_v49 = vmul.f32 1.442695, %v646_v28  ;;  %v681_v51 = vmul.f32 1.442695, %v653_v47 }
 0x283   : > { %v1734_v52 = vpop.eup %1164  ;;  %v701_v53 = vsel %vm592_vm1, %v1732_v35, 0.0 }
 0x284   : > { %1166 = vpow2.f32 %v667_v49  ;;  %702 = vadd.xlane.f32.xlu0 %v701_v53  ;;  %v722_v54 = vsel %vm592_vm1, %v1734_v52, 0.0 }
 0x285   : > { %1168 = vpow2.f32 %v681_v51  ;;  %723 = vadd.xlane.f32.xlu2 %v722_v54 }
 0x287   : > { %v613_v55 = vpop.xlane.xlu0 %612  ;;  %v634_v20 = vpop.xlane.xlu2 %633 }
 0x288   : > { %v647_v32 = vsub.f32 %v1663_v42, %v613_v55  ;;  %v654_v57 = vsub.f32 %v1667_v43, %v634_v20 }
 0x28a   : > { %v1742_v37 = vpop.eup %1166  ;;  %v669_v59 = vmul.f32 1.442695, %v647_v32  ;;  %v683_v60 = vmul.f32 1.442695, %v654_v57 }
 0x28b   : > { %v1744_v61 = vpop.eup %1168  ;;  %v704_v62 = vsel %vm592_vm1, %v1742_v37, 0.0 }
 0x28c   : > { %1170 = vpow2.f32 %v669_v59  ;;  %v725_v19 = vsel %vm592_vm1, %v1744_v61, 0.0 }
 0x28d   : > { %1172 = vpow2.f32 %v683_v60  ;;  %726 = vadd.xlane.f32.xlu1 %v725_v19  ;;  %705 = vadd.xlane.f32.xlu2 %v704_v62 }
 0x28f   : > { %v637_v0 = vpop.xlane.xlu1 %636 }
 0x290   : > { %v655_v42 = vsub.f32 %v1674_v50, %v637_v0 }
 0x292   : > { %v1751_v43 = vpop.eup %1170  ;;  %v685_v1 = vmul.f32 1.442695, %v655_v42 }
 0x293   : > { %v1753_v3 = vpop.eup %1172  ;;  %v707_v4 = vsel %vm592_vm1, %v1751_v43, 0.0 }
 0x294   : > { %1174 = vpow2.f32 %v685_v1  ;;  %v728_v7 = vsel %vm592_vm1, %v1753_v3, 0.0 }
 0x295   : > { %729 = vadd.xlane.f32.xlu0 %v728_v7  ;;  %708 = vadd.xlane.f32.xlu1 %v707_v4 }
 0x297   : > { %v616_v9 = vpop.xlane.xlu1 %615 }
 0x298   : > { %v648_v38 = vsub.f32 %v1683_v56, %v616_v9 }
 0x29a   : > { %v1760_v48 = vpop.eup %1174  ;;  %v671_v50 = vmul.f32 1.442695, %v648_v38 }
 0x29b   : > { %v731_v10 = vsel %vm592_vm1, %v1760_v48, 0.0 }
 0x29c   : > { %1176 = vpow2.f32 %v671_v50  ;;  %732 = vadd.xlane.f32.xlu2 %v731_v10 }
 0x29f   : > { %v691_v11 = vpop.xlane.xlu2 %690 }
 0x2a0   : > { %1178 = vrcp.f32 %v691_v11 }
 0x2a2   : > { %v1764_v12 = vpop.eup %1176 }
 0x2a3   : > { %v710_v14 = vsel %vm592_vm1, %v1764_v12, 0.0 }
 0x2a4   : > { %711 = vadd.xlane.f32.xlu0 %v710_v14 }
 0x2a6   : > { %v1179_v21 = vpop.eup %1178 }
 0x2a7   : > { %v640_v22 = vpop.xlane.xlu2 %639  ;;  %v753_v56 = vmul.f32 %v1179_v21, %v1687_v58 }
 0x2a8   : > { %v656_v23 = vsub.f32 %v1694_v2, %v640_v22 }
 0x2a9   : > { %1027 = vmatmul.msk.f32.vlgmr.msrb.gmra.mxu0 %vm592_vm1, %v753_v56 }
 0x2aa   : > { %v687_v30 = vmul.f32 1.442695, %v656_v23 }
 0x2ac   : > { %1180 = vpow2.f32 %v687_v30 }
 0x2af   : > { %v697_v2 = vpop.xlane.xlu2 %696 }
 0x2b2   : > { %v1771_v31 = vpop.eup %1180 }
 0x2b3   : > { %v734_v15 = vsel %vm592_vm1, %v1771_v31, 0.0 }
 0x2b4   : > { %735 = vadd.xlane.f32.xlu1 %v734_v15 }
 0x2df   : > { %v715_v63 = vpop.xlane.xlu0 %714 }
 0x2e0   : > { %1182 = vrcp.f32 %v715_v63 }
 0x2e6   : > { %v1183_v29 = vpop.eup %1182 }
 0x2e7   : > { %v694_v16 = vpop.xlane.xlu0 %693  ;;  %v761_v17 = vmul.f32 %v1183_v29, %v1706_v27  ;;  %v718_v58 = vpop.xlane.xlu1 %717 }
 0x2e8   : > { %1184 = vrcp.f32 %v694_v16 }
 0x2e9   : > { %1186 = vrcp.f32 %v718_v58  ;;  %1035 = vmatmul.msk.f32.vlgmr.msrb.gmra.mxu1 %vm592_vm1, %v761_v17 }
 0x2ea   : > { %1188 = vrcp.f32 %v697_v2 }
 0x2ee   : > { %v1185_v6 = vpop.eup %1184 }
 0x2ef   : > { %v1187_v5 = vpop.eup %1186  ;;  %v721_v26 = vpop.xlane.xlu0 %720  ;;  %v754_v34 = vmul.f32 %v1185_v6, %v1711_v33 }
 0x2f0   : > { %1190 = vrcp.f32 %v721_v26  ;;  %v762_v36 = vmul.f32 %v1187_v5, %v1714_v18  ;;  %v700_v27 = vpop.xlane.xlu1 %699  ;;  %v1189_v39 = vpop.eup %1188 }
 0x2f1   : > { %1028 = vmatmul.msk.f32.gmra.mxu0 %vm592_vm1, %v754_v34  ;;  %1192 = vrcp.f32 %v700_v27  ;;  %v755_v41 = vmul.f32 %v1189_v39, %v1698_v8 }
 0x2f2   : > { %1036 = vmatmul.msk.f32.gmra.mxu1 %vm592_vm1, %v762_v36 }
 0x2f6   : > { %v1191_v24 = vpop.eup %1190 }
 0x2f7   : > { %v763_v44 = vmul.f32 %v1191_v24, %v1724_v40  ;;  %v703_v33 = vpop.xlane.xlu0 %702  ;;  %v1193_v18 = vpop.eup %1192 }
 0x2f8   : > { %v724_v45 = vpop.xlane.xlu2 %723  ;;  %v756_v25 = vmul.f32 %v1193_v18, %v1722_v13 }
 0x2f9   : > { %1194 = vrcp.f32 %v724_v45  ;;  %1029 = vmatmul.msk.f32.gmra.mxu0 %vm592_vm1, %v755_v41 }
 0x2fa   : > { %1037 = vmatmul.msk.f32.gmra.mxu1 %vm592_vm1, %v763_v44  ;;  %1196 = vrcp.f32 %v703_v33 }
 0x2ff   : > { %v1195_v46 = vpop.eup %1194 }
 0x300   : > { %v727_v28 = vpop.xlane.xlu1 %726  ;;  %v764_v47 = vmul.f32 %v1195_v46, %v1734_v52  ;;  %v706_v8 = vpop.xlane.xlu2 %705 }
 0x301   : > { %1198 = vrcp.f32 %v727_v28  ;;  %1030 = vmatmul.msk.f32.gmra.mxu0 %vm592_vm1, %v756_v25  ;;  %v1197_v40 = vpop.eup %1196 }
 0x302   : > { %1038 = vmatmul.msk.f32.gmra.mxu1 %vm592_vm1, %v764_v47  ;;  %1200 = vrcp.f32 %v706_v8  ;;  %v757_v51 = vmul.f32 %v1197_v40, %v1732_v35 }
 0x307   : > { %v1199_v49 = vpop.eup %1198 }
 0x308   : > { %v730_v53 = vpop.xlane.xlu0 %729  ;;  %v765_v54 = vmul.f32 %v1199_v49, %v1744_v61  ;;  %v709_v13 = vpop.xlane.xlu1 %708 }
 0x309   : > { %1202 = vrcp.f32 %v730_v53  ;;  %1031 = vmatmul.msk.f32.gmra.mxu0 %vm592_vm1, %v757_v51  ;;  %v1201_v52 = vpop.eup %1200 }
 0x30a   : > { %1039 = vmatmul.msk.f32.gmra.mxu1 %vm592_vm1, %v765_v54  ;;  %1204 = vrcp.f32 %v709_v13  ;;  %v758_v32 = vmul.f32 %v1201_v52, %v1742_v37 }
 0x30f   : > { %v1203_v55 = vpop.eup %1202  ;;  %v733_v20 = vpop.xlane.xlu2 %732 }
 0x310   : > { %1206 = vrcp.f32 %v733_v20  ;;  %v766_v57 = vmul.f32 %v1203_v55, %v1753_v3  ;;  %v1205_v35 = vpop.eup %1204 }
 0x311   : > { %1032 = vmatmul.msk.f32.gmra.mxu0 %vm592_vm1, %v758_v32  ;;  %v759_v61 = vmul.f32 %v1205_v35, %v1751_v43 }
 0x312   : > { %1040 = vmatmul.msk.f32.gmra.mxu1 %vm592_vm1, %v766_v57 }
 0x316   : > { %v1207_v59 = vpop.eup %1206 }
 0x317   : > { %v712_v60 = vpop.xlane.xlu0 %711  ;;  %v767_v62 = vmul.f32 %v1207_v59, %v1760_v48 }
 0x318   : > { %1208 = vrcp.f32 %v712_v60 }
 0x319   : > { %1033 = vmatmul.msk.f32.gmra.mxu0 %vm592_vm1, %v759_v61 }
 0x31a   : > { %1041 = vmatmul.msk.f32.gmra.mxu1 %vm592_vm1, %v767_v62 }
 0x31e   : > { %v1209_v37 = vpop.eup %1208 }
 0x31f   : > { %v760_v19 = vmul.f32 %v1209_v37, %v1764_v12 }
 0x321   : > { %1034 = vmatmul.msk.f32.gmra.mxu0 %vm592_vm1, %v760_v19 }
 0x326   : > { %v810_v0 = vpop.f32.mrf.mxu0 }
 0x327   : > { %899 = vst [vmem:[%s1805_s15] sm:$0xff] %v810_v0  ;;  %v736_v42 = vpop.xlane.xlu1 %735 }
 0x328   : > { %1210 = vrcp.f32 %v736_v42 }
 0x32e   : > { %v1211_v43 = vpop.eup %1210 }
 0x32f   : > { %v768_v1 = vmul.f32 %v1211_v43, %v1771_v31 }
 0x331   : > { %1042 = vmatmul.msk.f32.gmra.mxu1 %vm592_vm1, %v768_v1 }
 0x366   : > { %v875_v3 = vpop.f32.mrf.mxu1 }
 0x367   : > { %907 = vst [vmem:[%s1805_s15 + $0x40] sm:$0xff] %v875_v3 }
 0x36e   : > { %v813_v4 = vpop.f32.mrf.mxu0 }
 0x36f   : > { %900 = vst [vmem:[%s1805_s15 + $0x8] sm:$0xff] %v813_v4  ;;  %v878_v7 = vpop.f32.mrf.mxu1 }
 0x370   : > { %908 = vst [vmem:[%s1805_s15 + $0x48] sm:$0xff] %v878_v7 }
 0x376   : > { %v816_v9 = vpop.f32.mrf.mxu0 }
 0x377   : > { %901 = vst [vmem:[%s1805_s15 + $0x10] sm:$0xff] %v816_v9  ;;  %v881_v38 = vpop.f32.mrf.mxu1 }
 0x378   : > { %909 = vst [vmem:[%s1805_s15 + $0x50] sm:$0xff] %v881_v38 }
 0x37e   : > { %v819_v48 = vpop.f32.mrf.mxu0 }
 0x37f   : > { %902 = vst [vmem:[%s1805_s15 + $0x18] sm:$0xff] %v819_v48  ;;  %v884_v50 = vpop.f32.mrf.mxu1 }
 0x380   : > { %910 = vst [vmem:[%s1805_s15 + $0x58] sm:$0xff] %v884_v50 }
 0x386   : > { %v822_v10 = vpop.f32.mrf.mxu0 }
 0x387   : > { %903 = vst [vmem:[%s1805_s15 + $0x20] sm:$0xff] %v822_v10  ;;  %v887_v11 = vpop.f32.mrf.mxu1 }
 0x388   : > { %911 = vst [vmem:[%s1805_s15 + $0x60] sm:$0xff] %v887_v11 }
 0x38e   : > { %v825_v12 = vpop.f32.mrf.mxu0 }
 0x38f   : > { %904 = vst [vmem:[%s1805_s15 + $0x28] sm:$0xff] %v825_v12  ;;  %v890_v14 = vpop.f32.mrf.mxu1 }
 0x390   : > { %912 = vst [vmem:[%s1805_s15 + $0x68] sm:$0xff] %v890_v14 }
 0x396   : > { %v828_v21 = vpop.f32.mrf.mxu0 }
 0x397   : > { %905 = vst [vmem:[%s1805_s15 + $0x30] sm:$0xff] %v828_v21  ;;  %v893_v22 = vpop.f32.mrf.mxu1 }
 0x398   : > { %913 = vst [vmem:[%s1805_s15 + $0x70] sm:$0xff] %v893_v22 }
 0x39e   : > { %v831_v56 = vpop.f32.mrf.mxu0 }
 0x39f   : > { %906 = vst [vmem:[%s1805_s15 + $0x38] sm:$0xff] %v831_v56 }
 0x3ae   : > { %v896_v23 = vpop.f32.mrf.mxu1 }
 0x3af   : > { %914 = vst [vmem:[%s1805_s15 + $0x78] sm:$0xff] %v896_v23 }
 0x3b0   : > { %1299 = shalt.err (!%p1296_p10)
}
 0x3b1   : > { %s1349_s4 = smov 128   ;;  %s1350_s5 = smov 8  }
 0x3b2   : > { %1091 = dma.vmem_to_hbm [thread:$0]  (%p1433_p7), %s930_s19, 2048, %s932_s21, %s916_s22, %s1349_s4, %s1349_s4, %s1350_s5  }
 0x3b3 PF: > { %s946_s6 = sand.u32 1, %s1330_s9   ;;  %p1867_p12 = scmp.ge.s32.totalorder %s1342_s12, 2 }
 0x3b4   : > { %s947_s7 = scalar_lea.sflag [#allocation4], %s946_s6 }
 0x3b5   : > { %p1102_p13 = pnand %p1867_p12, %p1401_p6 }
 0x3b7   : > { %p1103_p0 = pneg %p1102_p13 }
 0x3b9   : > { %1325 = dma.done.wait (%p1103_p0), %s947_s7, 2048  }
 0x3ba   : > { %1327 = vsyncadd (%p1103_p0), %s947_s7, 4294965248  ;;  %p16_p3 = scmp.ge.s32.totalorder %s1419_s23, 4   ;;  %s1868_s9 = smov %s1334_s10 }
 0x3bb   : > { %s1869_s10 = smov %s1338_s11  ;;  %s1870_s11 = smov %s1429_s28 }
 0x3bc   : > { %s1871_s12 = smov %s1419_s23  ;;  %18 = sbr.rel (!%p16_p3) target bundleno = 6 (0x6), region = 77 }
 0x3c1   :  { %953 = vsyncpa [#allocation3], 1 }
 0x3c2   :  { %955 = vsyncpa [#allocation3 + $0x1], 1 }
 0x3c3   :  { %956 = vsyncpa [#allocation6], 1 }
 0x3c4   :  { %957 = vsyncpa [#allocation4], 1 }
 0x3c5   :  { %959 = vsyncpa [#allocation4 + $0x1], 1 }

</bundles_post_ra>
